<compile_context>
chip_gen: v7x
topology: tpu7x:2x2x1
jax: 0.10.0
libtpu: 0.0.40
codegen_flags: <defaults>
</compile_context>

<pallas_src>
import functools

import numpy as np
import jax
import jax.numpy as jnp
from jax.experimental import pallas as pl
from jax.experimental.pallas import tpu as pltpu

BN_EPS = 1e-5
_LANES = 128


def _round_up(x, m):
    return (x + m - 1) // m * m


# ---------------------------------------------------------------------------
# Pallas kernels
# ---------------------------------------------------------------------------
def _matmul_bias_stats_kernel(p_ref, w_ref, b_ref, y_ref, stats_ref):
    """One M-tile of conv-as-matmul (+bias) plus per-tile BN partial sums."""
    y = jnp.dot(p_ref[...], w_ref[...], preferred_element_type=jnp.float32)
    y = y + b_ref[...]
    y_ref[...] = y
    ssum = jnp.sum(y, axis=0, keepdims=True)       # per-channel sum
    ssq = jnp.sum(y * y, axis=0, keepdims=True)    # per-channel sum of squares
    pad = jnp.zeros((6, y.shape[1]), jnp.float32)  # pad to 8 sublanes
    stats_ref[...] = jnp.concatenate([ssum, ssq, pad], axis=0)


def _bn_relu_kernel(y_ref, scale_ref, shift_ref, o_ref):
    """Apply precomputed BN affine (scale/shift) + ReLU; store bf16."""
    o_ref[...] = jnp.maximum(
        y_ref[...] * scale_ref[...] + shift_ref[...], 0.0).astype(o_ref.dtype)


def _bn_add_proj_relu_kernel(y_ref, sp_ref, wc_ref, scale_ref, shift_ref,
                             bc_ref, o_ref):
    """BN affine on conv_b output + 1x1-conv shortcut matmul + add + ReLU."""
    sc = jnp.dot(sp_ref[...], wc_ref[...],
                 preferred_element_type=jnp.float32) + bc_ref[...]
    o_ref[...] = jnp.maximum(
        y_ref[...] * scale_ref[...] + shift_ref[...] + sc, 0.0)


def _bn_add_relu_kernel(y_ref, sp_ref, scale_ref, shift_ref, o_ref):
    """BN affine on conv_b output + identity shortcut add + ReLU."""
    o_ref[...] = jnp.maximum(
        y_ref[...] * scale_ref[...] + shift_ref[...] + sp_ref[...], 0.0)


def _cparams():
    return pltpu.CompilerParams(
        dimension_semantics=("parallel",),
        vmem_limit_bytes=48 * 1024 * 1024)


# ---------------------------------------------------------------------------
# pallas_call wrappers
# ---------------------------------------------------------------------------
def _conv_stats(patches, w, b, tm):
    mpad, k = patches.shape
    cpad = w.shape[1]
    nt = mpad // tm
    return pl.pallas_call(
        _matmul_bias_stats_kernel,
        out_shape=(jax.ShapeDtypeStruct((mpad, cpad), jnp.float32),
                   jax.ShapeDtypeStruct((8 * nt, cpad), jnp.float32)),
        grid=(nt,),
        in_specs=[pl.BlockSpec((tm, k), lambda i: (i, 0)),
                  pl.BlockSpec((k, cpad), lambda i: (0, 0)),
                  pl.BlockSpec((1, cpad), lambda i: (0, 0))],
        out_specs=(pl.BlockSpec((tm, cpad), lambda i: (i, 0)),
                   pl.BlockSpec((8, cpad), lambda i: (i, 0))),
        compiler_params=_cparams(),
    )(patches, w, b)


def _bn_relu(y, scale, shift, tm):
    mpad, cpad = y.shape
    nt = mpad // tm
    return pl.pallas_call(
        _bn_relu_kernel,
        out_shape=jax.ShapeDtypeStruct((mpad, cpad), jnp.bfloat16),
        grid=(nt,),
        in_specs=[pl.BlockSpec((tm, cpad), lambda i: (i, 0)),
                  pl.BlockSpec((1, cpad), lambda i: (0, 0)),
                  pl.BlockSpec((1, cpad), lambda i: (0, 0))],
        out_specs=pl.BlockSpec((tm, cpad), lambda i: (i, 0)),
        compiler_params=_cparams(),
    )(y, scale, shift)


def _bn_add_proj_relu(y, sp, wc, scale, shift, bc, tm):
    mpad, cpad = y.shape
    cin = sp.shape[1]
    nt = mpad // tm
    return pl.pallas_call(
        _bn_add_proj_relu_kernel,
        out_shape=jax.ShapeDtypeStruct((mpad, cpad), jnp.float32),
        grid=(nt,),
        in_specs=[pl.BlockSpec((tm, cpad), lambda i: (i, 0)),
                  pl.BlockSpec((tm, cin), lambda i: (i, 0)),
                  pl.BlockSpec((cin, cpad), lambda i: (0, 0)),
                  pl.BlockSpec((1, cpad), lambda i: (0, 0)),
                  pl.BlockSpec((1, cpad), lambda i: (0, 0)),
                  pl.BlockSpec((1, cpad), lambda i: (0, 0))],
        out_specs=pl.BlockSpec((tm, cpad), lambda i: (i, 0)),
        compiler_params=_cparams(),
    )(y, sp, wc, scale, shift, bc)


def _bn_add_relu(y, sp, scale, shift, tm):
    mpad, cpad = y.shape
    nt = mpad // tm
    return pl.pallas_call(
        _bn_add_relu_kernel,
        out_shape=jax.ShapeDtypeStruct((mpad, cpad), jnp.float32),
        grid=(nt,),
        in_specs=[pl.BlockSpec((tm, cpad), lambda i: (i, 0)),
                  pl.BlockSpec((tm, cpad), lambda i: (i, 0)),
                  pl.BlockSpec((1, cpad), lambda i: (0, 0)),
                  pl.BlockSpec((1, cpad), lambda i: (0, 0))],
        out_specs=pl.BlockSpec((tm, cpad), lambda i: (i, 0)),
        compiler_params=_cparams(),
    )(y, sp, scale, shift)


# ---------------------------------------------------------------------------
# Glue: im2col, padding, BN stat finalize
# ---------------------------------------------------------------------------
def _im2col(x_nhwc, ksize, stride, padding):
    """x: [N,H,W,C] -> ([N*Ho*Wo, ksize*ksize*C], (N,Ho,Wo))  (kh,kw,c order)."""
    N, H, W, C = x_nhwc.shape
    xp = jnp.pad(x_nhwc, ((0, 0), (padding, padding), (padding, padding), (0, 0)))
    Ho = (H + 2 * padding - ksize) // stride + 1
    Wo = (W + 2 * padding - ksize) // stride + 1
    cols = []
    for kh in range(ksize):
        for kw in range(ksize):
            cols.append(xp[:, kh:kh + stride * Ho:stride,
                           kw:kw + stride * Wo:stride, :])
    patches = jnp.concatenate(cols, axis=-1)
    return patches.reshape(N * Ho * Wo, ksize * ksize * C), (N, Ho, Wo)


def _pad_cols(a, cpad):
    return jnp.pad(a, [(0, 0)] * (a.ndim - 1) + [(0, cpad - a.shape[-1])])


def _pad_rows(a, mpad):
    return jnp.pad(a, [(0, mpad - a.shape[0])] + [(0, 0)] * (a.ndim - 1))


def _finalize_bn(stats, m_real, n_pad_rows, bias_pad, gamma_pad, beta_pad):
    """Per-tile partial sums -> BN affine scale/shift.

    Zero-padded patch rows produce y == bias exactly, so their contribution
    (n_pad_rows * bias / bias^2) is subtracted analytically.
    """
    st = stats.reshape(-1, 8, stats.shape[-1])
    ssum = st[:, 0, :].sum(axis=0) - n_pad_rows * bias_pad
    ssq = st[:, 1, :].sum(axis=0) - n_pad_rows * bias_pad * bias_pad
    mean = ssum / m_real
    var = jnp.maximum(ssq / m_real - mean * mean, 0.0)
    scale = gamma_pad * jax.lax.rsqrt(var + BN_EPS)
    shift = beta_pad - mean * scale
    return scale, shift


# ---------------------------------------------------------------------------
# Forward pass
# ---------------------------------------------------------------------------
def residual_forward(x_nchw, params, *, stride, use_one_d, tile_m=512):
    x = jnp.transpose(x_nchw, (0, 2, 3, 1)).astype(jnp.float32)   # NHWC
    N, H, W, Cin = x.shape
    Cout = params["w_a"].shape[-1]
    Cpad = _round_up(Cout, _LANES)

    # ---- conv_a (3x3, pad 1, stride) + BN_a + ReLU -------------------------
    pa, (_, Ho, Wo) = _im2col(x, 3, stride, 1)
    M = N * Ho * Wo
    TM = min(tile_m, _round_up(M, 16))       # multiple of 16 (bf16 sublanes)
    Mpad = _round_up(M, TM)

    pa = _pad_rows(pa, Mpad).astype(jnp.bfloat16)
    wa = _pad_cols(params["w_a"].reshape(9 * Cin, Cout), Cpad).astype(jnp.bfloat16)
    ba = _pad_cols(params["b_a"], Cpad).astype(jnp.float32)
    ga = _pad_cols(params["g_a"], Cpad).astype(jnp.float32)
    bea = _pad_cols(params["be_a"], Cpad).astype(jnp.float32)

    y_a, st_a = _conv_stats(pa, wa, ba[None, :], TM)
    scale_a, shift_a = _finalize_bn(st_a, M, Mpad - M, ba, ga, bea)
    h_a = _bn_relu(y_a, scale_a[None, :], shift_a[None, :], TM)   # bf16

    # ---- conv_b (3x3, pad 1, stride 1) + BN_b ------------------------------
    h = h_a[:M, :Cout].reshape(N, Ho, Wo, Cout)
    pb, _ = _im2col(h, 3, 1, 1)
    pb = _pad_rows(pb, Mpad)                                      # bf16
    wb = _pad_cols(params["w_b"].reshape(9 * Cout, Cout), Cpad).astype(jnp.bfloat16)
    bb = _pad_cols(params["b_b"], Cpad).astype(jnp.float32)
    gb = _pad_cols(params["g_b"], Cpad).astype(jnp.float32)
    beb = _pad_cols(params["be_b"], Cpad).astype(jnp.float32)

    y_b, st_b = _conv_stats(pb, wb, bb[None, :], TM)
    scale_b, shift_b = _finalize_bn(st_b, M, Mpad - M, bb, gb, beb)

    # ---- shortcut + BN_b apply + residual add + ReLU -----------------------
    if use_one_d:
        sp = x[:, ::stride, ::stride, :].reshape(M, Cin)
        sp = _pad_rows(sp, Mpad).astype(jnp.bfloat16)
        wc = _pad_cols(params["w_c"], Cpad).astype(jnp.bfloat16)
        bc = _pad_cols(params["b_c"], Cpad).astype(jnp.float32)
        out = _bn_add_proj_relu(y_b, sp, wc, scale_b[None, :], shift_b[None, :],
                                bc[None, :], TM)
    else:
        assert stride == 1 and Cin == Cout
        sp = _pad_rows(_pad_cols(x.reshape(M, Cin), Cpad), Mpad)  # f32 identity
        out = _bn_add_relu(y_b, sp, scale_b[None, :], shift_b[None, :], TM)

    out = out[:M, :Cout].reshape(N, Ho, Wo, Cout)
    return jnp.transpose(out, (0, 3, 1, 2))                       # NCHW


# ---------------------------------------------------------------------------
# Pure-JAX reference (mirrors the PyTorch module in training mode)
# ---------------------------------------------------------------------------
def residual_reference(x, p, *, stride, use_one_d):
    def conv(x, w_hwio, b, s, pad):
        y = jax.lax.conv_general_dilated(
            x, w_hwio, window_strides=(s, s), padding=((pad, pad), (pad, pad)),
            dimension_numbers=("NCHW", "HWIO", "NCHW"))
        return y + b[None, :, None, None]

    def bn(x, g, b):
        mean = x.mean(axis=(0, 2, 3), keepdims=True)
        var = jnp.square(x - mean).mean(axis=(0, 2, 3), keepdims=True)
        xn = (x - mean) / jnp.sqrt(var + BN_EPS)
        return xn * g[None, :, None, None] + b[None, :, None, None]

    y = jax.nn.relu(bn(conv(x, p["w_a"], p["b_a"], stride, 1), p["g_a"], p["be_a"]))
    y = bn(conv(y, p["w_b"], p["b_b"], 1, 1), p["g_b"], p["be_b"])
    sc = conv(x, p["w_c"][None, None], p["b_c"], stride, 0) if use_one_d else x
    return jax.nn.relu(y + sc)


# ---------------------------------------------------------------------------
if __name__ == "__main__":
    key = jax.random.PRNGKey(0)

    def make_params(k, cin, cout, use_one_d):
        ks = jax.random.split(k, 10)
        p = {
            "w_a": 0.1 * jax.random.normal(ks[0], (3, 3, cin, cout), jnp.float32),
            "b_a": 0.1 * jax.random.normal(ks[1], (cout,), jnp.float32),
            "w_b": 0.1 * jax.random.normal(ks[2], (3, 3, cout, cout), jnp.float32),
            "b_b": 0.1 * jax.random.normal(ks[3], (cout,), jnp.float32),
            "g_a": 1.0 + 0.1 * jax.random.normal(ks[4], (cout,), jnp.float32),
            "be_a": 0.1 * jax.random.normal(ks[5], (cout,), jnp.float32),
            "g_b": 1.0 + 0.1 * jax.random.normal(ks[6], (cout,), jnp.float32),
            "be_b": 0.1 * jax.random.normal(ks[7], (cout,), jnp.float32),
        }
        if use_one_d:
            p["w_c"] = 0.1 * jax.random.normal(ks[8], (cin, cout), jnp.float32)
            p["b_c"] = 0.1 * jax.random.normal(ks[9], (cout,), jnp.float32)
        return p

    fwd = jax.jit(residual_forward,
                  static_argnames=("stride", "use_one_d", "tile_m"))

    # case 1: downsampling block with 1x1-conv shortcut (exercises M-padding
    # correction: M=128, TM=48 -> Mpad=144, 3-tile grid)
    k1, k2, k3, k4 = jax.random.split(key, 4)
    x1 = jax.random.normal(k1, (2, 4, 16, 16), jnp.float32)
    p1 = make_params(k2, 4, 8, True)
    out1 = jax.block_until_ready(
        fwd(x1, p1, stride=2, use_one_d=True, tile_m=48))
    ref1 = jax.block_until_ready(
        residual_reference(x1, p1, stride=2, use_one_d=True))
    assert out1.shape == (2, 8, 8, 8), out1.shape
    if not np.allclose(np.asarray(out1), np.asarray(ref1), rtol=3e-2, atol=3e-2):
        raise AssertionError("Pallas residual block (projection) mismatch")

    # case 2: identity-shortcut block (M=512, TM=64 -> 8-tile grid)
    x2 = jax.random.normal(k3, (2, 8, 16, 16), jnp.float32)
    p2 = make_params(k4, 8, 8, False)
    out2 = jax.block_until_ready(
        fwd(x2, p2, stride=1, use_one_d=False, tile_m=64))
    ref2 = jax.block_until_ready(
        residual_reference(x2, p2, stride=1, use_one_d=False))
    assert out2.shape == (2, 8, 16, 16), out2.shape
    if not np.allclose(np.asarray(out2), np.asarray(ref2), rtol=3e-2, atol=3e-2):
        raise AssertionError("Pallas residual block (identity) mismatch")

    print("KERNEL_OK")
</pallas_src>

<mosaic_0001>
module attributes {stable_mosaic.version = 11 : i64} {
  func.func @_matmul_bias_stats_kernel(%arg0: i32, %arg1: memref<48x36xbf16, #tpu.memory_space<vmem>>, %arg2: memref<36x128xbf16, #tpu.memory_space<vmem>>, %arg3: memref<1x128xf32, #tpu.memory_space<vmem>>, %arg4: memref<48x128xf32, #tpu.memory_space<vmem>>, %arg5: memref<8x128xf32, #tpu.memory_space<vmem>>) attributes {dimension_semantics = [#tpu.dimension_semantics<parallel>], iteration_bounds = array<i64: 3>, scalar_prefetch = 0 : i64, scratch_operands = 0 : i64, tpu.core_type = #tpu.core_type<tc>, window_params = [{transform_indices = @transform_0, window_bounds = array<i64: 48, 36>}, {pipeline_mode = #tpu.pipeline_mode<synchronous>, transform_indices = @transform_1, window_bounds = array<i64: 36, 128>}, {pipeline_mode = #tpu.pipeline_mode<synchronous>, transform_indices = @transform_2, window_bounds = array<i64: 1, 128>}, {transform_indices = @transform_3, window_bounds = array<i64: 48, 128>}, {transform_indices = @transform_4, window_bounds = array<i64: 8, 128>}]} {
    %c0 = arith.constant 0 : index
    %c0_0 = arith.constant 0 : index
    %0 = vector.load %arg1[%c0, %c0_0] : memref<48x36xbf16, #tpu.memory_space<vmem>>, vector<48x36xbf16>
    %c0_1 = arith.constant 0 : index
    %c0_2 = arith.constant 0 : index
    %1 = vector.load %arg2[%c0_1, %c0_2] : memref<36x128xbf16, #tpu.memory_space<vmem>>, vector<36x128xbf16>
    %cst = arith.constant dense<0.000000e+00> : vector<48x128xf32>
    %2 = tpu.matmul %0, %1, %cst {dimension_numbers = #tpu.dot_dimension_numbers<[1], [0], [0], [1], [0, 0, 1, 1], [], []>} : vector<48x36xbf16>, vector<36x128xbf16>, vector<48x128xf32> -> vector<48x128xf32>
    %c0_3 = arith.constant 0 : index
    %c0_4 = arith.constant 0 : index
    %3 = vector.load %arg3[%c0_3, %c0_4] : memref<1x128xf32, #tpu.memory_space<vmem>>, vector<1x128xf32>
    %4 = vector.broadcast %3 : vector<1x128xf32> to vector<48x128xf32>
    %5 = arith.addf %2, %4 : vector<48x128xf32>
    %c0_5 = arith.constant 0 : index
    %c0_6 = arith.constant 0 : index
    %6 = vector.load %arg4[%c0_5, %c0_6] : memref<48x128xf32, #tpu.memory_space<vmem>>, vector<48x128xf32>
    tpu.vector_store %arg4[%c0_5, %c0_6], %5 {strides = array<i32>} : memref<48x128xf32, #tpu.memory_space<vmem>>, vector<48x128xf32>,
    %cst_7 = arith.constant dense<0.000000e+00> : vector<128xf32>
    %7 = vector.multi_reduction <add>, %5, %cst_7 [0] : vector<48x128xf32> to vector<128xf32>
    %8 = vector.shape_cast %7 : vector<128xf32> to vector<1x128xf32>
    %9 = arith.mulf %5, %5 : vector<48x128xf32>
    %cst_8 = arith.constant dense<0.000000e+00> : vector<128xf32>
    %10 = vector.multi_reduction <add>, %9, %cst_8 [0] : vector<48x128xf32> to vector<128xf32>
    %11 = vector.shape_cast %10 : vector<128xf32> to vector<1x128xf32>
    %cst_9 = arith.constant 0.000000e+00 : f32
    %12 = vector.broadcast %cst_9 : f32 to vector<6x128xf32>
    %13 = tpu.concatenate %8, %11, %12 in 0 : vector<1x128xf32>, vector<1x128xf32>, vector<6x128xf32> -> vector<8x128xf32>
    %c0_10 = arith.constant 0 : index
    %c0_11 = arith.constant 0 : index
    %14 = vector.load %arg5[%c0_10, %c0_11] : memref<8x128xf32, #tpu.memory_space<vmem>>, vector<8x128xf32>
    tpu.vector_store %arg5[%c0_10, %c0_11], %13 {strides = array<i32>} : memref<8x128xf32, #tpu.memory_space<vmem>>, vector<8x128xf32>,
    return
  }
  func.func @transform_0(%arg0: i32) -> (i32, i32) {
    %c0_i32 = arith.constant 0 : i32
    %c0_i32_0 = arith.constant 0 : i32
    return %arg0, %c0_i32 : i32, i32
  }
  func.func @transform_1(%arg0: i32) -> (i32, i32) {
    %c0_i32 = arith.constant 0 : i32
    %c0_i32_0 = arith.constant 0 : i32
    %c0_i32_1 = arith.constant 0 : i32
    return %c0_i32, %c0_i32_0 : i32, i32
  }
  func.func @transform_2(%arg0: i32) -> (i32, i32) {
    %c0_i32 = arith.constant 0 : i32
    %c0_i32_0 = arith.constant 0 : i32
    %c0_i32_1 = arith.constant 0 : i32
    return %c0_i32, %c0_i32_0 : i32, i32
  }
  func.func @transform_3(%arg0: i32) -> (i32, i32) {
    %c0_i32 = arith.constant 0 : i32
    %c0_i32_0 = arith.constant 0 : i32
    return %arg0, %c0_i32 : i32, i32
  }
  func.func @transform_4(%arg0: i32) -> (i32, i32) {
    %c0_i32 = arith.constant 0 : i32
    %c0_i32_0 = arith.constant 0 : i32
    return %arg0, %c0_i32 : i32, i32
  }
}

module attributes {stable_mosaic.version = 11 : i64} {
  func.func @_bn_relu_kernel(%arg0: i32, %arg1: memref<48x128xf32, #tpu.memory_space<vmem>>, %arg2: memref<1x128xf32, #tpu.memory_space<vmem>>, %arg3: memref<1x128xf32, #tpu.memory_space<vmem>>, %arg4: memref<48x128xbf16, #tpu.memory_space<vmem>>) attributes {dimension_semantics = [#tpu.dimension_semantics<parallel>], iteration_bounds = array<i64: 3>, scalar_prefetch = 0 : i64, scratch_operands = 0 : i64, tpu.core_type = #tpu.core_type<tc>, window_params = [{transform_indices = @transform_0, window_bounds = array<i64: 48, 128>}, {pipeline_mode = #tpu.pipeline_mode<synchronous>, transform_indices = @transform_1, window_bounds = array<i64: 1, 128>}, {pipeline_mode = #tpu.pipeline_mode<synchronous>, transform_indices = @transform_2, window_bounds = array<i64: 1, 128>}, {transform_indices = @transform_3, window_bounds = array<i64: 48, 128>}]} {
    %c0 = arith.constant 0 : index
    %c0_0 = arith.constant 0 : index
    %0 = vector.load %arg1[%c0, %c0_0] : memref<48x128xf32, #tpu.memory_space<vmem>>, vector<48x128xf32>
    %c0_1 = arith.constant 0 : index
    %c0_2 = arith.constant 0 : index
    %1 = vector.load %arg2[%c0_1, %c0_2] : memref<1x128xf32, #tpu.memory_space<vmem>>, vector<1x128xf32>
    %2 = vector.broadcast %1 : vector<1x128xf32> to vector<48x128xf32>
    %3 = arith.mulf %0, %2 : vector<48x128xf32>
    %c0_3 = arith.constant 0 : index
    %c0_4 = arith.constant 0 : index
    %4 = vector.load %arg3[%c0_3, %c0_4] : memref<1x128xf32, #tpu.memory_space<vmem>>, vector<1x128xf32>
    %5 = vector.broadcast %4 : vector<1x128xf32> to vector<48x128xf32>
    %6 = arith.addf %3, %5 : vector<48x128xf32>
    %cst = arith.constant 0.000000e+00 : f32
    %7 = vector.broadcast %cst : f32 to vector<48x128xf32>
    %8 = arith.maximumf %6, %7 : vector<48x128xf32>
    %9 = arith.truncf %8 : vector<48x128xf32> to vector<48x128xbf16>
    %c0_5 = arith.constant 0 : index
    %c0_6 = arith.constant 0 : index
    %10 = vector.load %arg4[%c0_5, %c0_6] : memref<48x128xbf16, #tpu.memory_space<vmem>>, vector<48x128xbf16>
    tpu.vector_store %arg4[%c0_5, %c0_6], %9 {strides = array<i32>} : memref<48x128xbf16, #tpu.memory_space<vmem>>, vector<48x128xbf16>,
    return
  }
  func.func @transform_0(%arg0: i32) -> (i32, i32) {
    %c0_i32 = arith.constant 0 : i32
    %c0_i32_0 = arith.constant 0 : i32
    return %arg0, %c0_i32 : i32, i32
  }
  func.func @transform_1(%arg0: i32) -> (i32, i32) {
    %c0_i32 = arith.constant 0 : i32
    %c0_i32_0 = arith.constant 0 : i32
    %c0_i32_1 = arith.constant 0 : i32
    return %c0_i32, %c0_i32_0 : i32, i32
  }
  func.func @transform_2(%arg0: i32) -> (i32, i32) {
    %c0_i32 = arith.constant 0 : i32
    %c0_i32_0 = arith.constant 0 : i32
    %c0_i32_1 = arith.constant 0 : i32
    return %c0_i32, %c0_i32_0 : i32, i32
  }
  func.func @transform_3(%arg0: i32) -> (i32, i32) {
    %c0_i32 = arith.constant 0 : i32
    %c0_i32_0 = arith.constant 0 : i32
    return %arg0, %c0_i32 : i32, i32
  }
}

module attributes {stable_mosaic.version = 11 : i64} {
  func.func @_matmul_bias_stats_kernel(%arg0: i32, %arg1: memref<48x72xbf16, #tpu.memory_space<vmem>>, %arg2: memref<72x128xbf16, #tpu.memory_space<vmem>>, %arg3: memref<1x128xf32, #tpu.memory_space<vmem>>, %arg4: memref<48x128xf32, #tpu.memory_space<vmem>>, %arg5: memref<8x128xf32, #tpu.memory_space<vmem>>) attributes {dimension_semantics = [#tpu.dimension_semantics<parallel>], iteration_bounds = array<i64: 3>, scalar_prefetch = 0 : i64, scratch_operands = 0 : i64, tpu.core_type = #tpu.core_type<tc>, window_params = [{transform_indices = @transform_0, window_bounds = array<i64: 48, 72>}, {pipeline_mode = #tpu.pipeline_mode<synchronous>, transform_indices = @transform_1, window_bounds = array<i64: 72, 128>}, {pipeline_mode = #tpu.pipeline_mode<synchronous>, transform_indices = @transform_2, window_bounds = array<i64: 1, 128>}, {transform_indices = @transform_3, window_bounds = array<i64: 48, 128>}, {transform_indices = @transform_4, window_bounds = array<i64: 8, 128>}]} {
    %c0 = arith.constant 0 : index
    %c0_0 = arith.constant 0 : index
    %0 = vector.load %arg1[%c0, %c0_0] : memref<48x72xbf16, #tpu.memory_space<vmem>>, vector<48x72xbf16>
    %c0_1 = arith.constant 0 : index
    %c0_2 = arith.constant 0 : index
    %1 = vector.load %arg2[%c0_1, %c0_2] : memref<72x128xbf16, #tpu.memory_space<vmem>>, vector<72x128xbf16>
    %cst = arith.constant dense<0.000000e+00> : vector<48x128xf32>
    %2 = tpu.matmul %0, %1, %cst {dimension_numbers = #tpu.dot_dimension_numbers<[1], [0], [0], [1], [0, 0, 1, 1], [], []>} : vector<48x72xbf16>, vector<72x128xbf16>, vector<48x128xf32> -> vector<48x128xf32>
    %c0_3 = arith.constant 0 : index
    %c0_4 = arith.constant 0 : index
    %3 = vector.load %arg3[%c0_3, %c0_4] : memref<1x128xf32, #tpu.memory_space<vmem>>, vector<1x128xf32>
    %4 = vector.broadcast %3 : vector<1x128xf32> to vector<48x128xf32>
    %5 = arith.addf %2, %4 : vector<48x128xf32>
    %c0_5 = arith.constant 0 : index
    %c0_6 = arith.constant 0 : index
    %6 = vector.load %arg4[%c0_5, %c0_6] : memref<48x128xf32, #tpu.memory_space<vmem>>, vector<48x128xf32>
    tpu.vector_store %arg4[%c0_5, %c0_6], %5 {strides = array<i32>} : memref<48x128xf32, #tpu.memory_space<vmem>>, vector<48x128xf32>,
    %cst_7 = arith.constant dense<0.000000e+00> : vector<128xf32>
    %7 = vector.multi_reduction <add>, %5, %cst_7 [0] : vector<48x128xf32> to vector<128xf32>
    %8 = vector.shape_cast %7 : vector<128xf32> to vector<1x128xf32>
    %9 = arith.mulf %5, %5 : vector<48x128xf32>
    %cst_8 = arith.constant dense<0.000000e+00> : vector<128xf32>
    %10 = vector.multi_reduction <add>, %9, %cst_8 [0] : vector<48x128xf32> to vector<128xf32>
    %11 = vector.shape_cast %10 : vector<128xf32> to vector<1x128xf32>
    %cst_9 = arith.constant 0.000000e+00 : f32
    %12 = vector.broadcast %cst_9 : f32 to vector<6x128xf32>
    %13 = tpu.concatenate %8, %11, %12 in 0 : vector<1x128xf32>, vector<1x128xf32>, vector<6x128xf32> -> vector<8x128xf32>
    %c0_10 = arith.constant 0 : index
    %c0_11 = arith.constant 0 : index
    %14 = vector.load %arg5[%c0_10, %c0_11] : memref<8x128xf32, #tpu.memory_space<vmem>>, vector<8x128xf32>
    tpu.vector_store %arg5[%c0_10, %c0_11], %13 {strides = array<i32>} : memref<8x128xf32, #tpu.memory_space<vmem>>, vector<8x128xf32>,
    return
  }
  func.func @transform_0(%arg0: i32) -> (i32, i32) {
    %c0_i32 = arith.constant 0 : i32
    %c0_i32_0 = arith.constant 0 : i32
    return %arg0, %c0_i32 : i32, i32
  }
  func.func @transform_1(%arg0: i32) -> (i32, i32) {
    %c0_i32 = arith.constant 0 : i32
    %c0_i32_0 = arith.constant 0 : i32
    %c0_i32_1 = arith.constant 0 : i32
    return %c0_i32, %c0_i32_0 : i32, i32
  }
  func.func @transform_2(%arg0: i32) -> (i32, i32) {
    %c0_i32 = arith.constant 0 : i32
    %c0_i32_0 = arith.constant 0 : i32
    %c0_i32_1 = arith.constant 0 : i32
    return %c0_i32, %c0_i32_0 : i32, i32
  }
  func.func @transform_3(%arg0: i32) -> (i32, i32) {
    %c0_i32 = arith.constant 0 : i32
    %c0_i32_0 = arith.constant 0 : i32
    return %arg0, %c0_i32 : i32, i32
  }
  func.func @transform_4(%arg0: i32) -> (i32, i32) {
    %c0_i32 = arith.constant 0 : i32
    %c0_i32_0 = arith.constant 0 : i32
    return %arg0, %c0_i32 : i32, i32
  }
}

module attributes {stable_mosaic.version = 11 : i64} {
  func.func @_bn_add_proj_relu_kernel(%arg0: i32, %arg1: memref<48x128xf32, #tpu.memory_space<vmem>>, %arg2: memref<48x4xbf16, #tpu.memory_space<vmem>>, %arg3: memref<4x128xbf16, #tpu.memory_space<vmem>>, %arg4: memref<1x128xf32, #tpu.memory_space<vmem>>, %arg5: memref<1x128xf32, #tpu.memory_space<vmem>>, %arg6: memref<1x128xf32, #tpu.memory_space<vmem>>, %arg7: memref<48x128xf32, #tpu.memory_space<vmem>>) attributes {dimension_semantics = [#tpu.dimension_semantics<parallel>], iteration_bounds = array<i64: 3>, scalar_prefetch = 0 : i64, scratch_operands = 0 : i64, tpu.core_type = #tpu.core_type<tc>, window_params = [{transform_indices = @transform_0, window_bounds = array<i64: 48, 128>}, {transform_indices = @transform_1, window_bounds = array<i64: 48, 4>}, {pipeline_mode = #tpu.pipeline_mode<synchronous>, transform_indices = @transform_2, window_bounds = array<i64: 4, 128>}, {pipeline_mode = #tpu.pipeline_mode<synchronous>, transform_indices = @transform_3, window_bounds = array<i64: 1, 128>}, {pipeline_mode = #tpu.pipeline_mode<synchronous>, transform_indices = @transform_4, window_bounds = array<i64: 1, 128>}, {pipeline_mode = #tpu.pipeline_mode<synchronous>, transform_indices = @transform_5, window_bounds = array<i64: 1, 128>}, {transform_indices = @transform_6, window_bounds = array<i64: 48, 128>}]} {
    %c0 = arith.constant 0 : index
    %c0_0 = arith.constant 0 : index
    %0 = vector.load %arg2[%c0, %c0_0] : memref<48x4xbf16, #tpu.memory_space<vmem>>, vector<48x4xbf16>
    %c0_1 = arith.constant 0 : index
    %c0_2 = arith.constant 0 : index
    %1 = vector.load %arg3[%c0_1, %c0_2] : memref<4x128xbf16, #tpu.memory_space<vmem>>, vector<4x128xbf16>
    %cst = arith.constant dense<0.000000e+00> : vector<48x128xf32>
    %2 = tpu.matmul %0, %1, %cst {dimension_numbers = #tpu.dot_dimension_numbers<[1], [0], [0], [1], [0, 0, 1, 1], [], []>} : vector<48x4xbf16>, vector<4x128xbf16>, vector<48x128xf32> -> vector<48x128xf32>
    %c0_3 = arith.constant 0 : index
    %c0_4 = arith.constant 0 : index
    %3 = vector.load %arg6[%c0_3, %c0_4] : memref<1x128xf32, #tpu.memory_space<vmem>>, vector<1x128xf32>
    %4 = vector.broadcast %3 : vector<1x128xf32> to vector<48x128xf32>
    %5 = arith.addf %2, %4 : vector<48x128xf32>
    %c0_5 = arith.constant 0 : index
    %c0_6 = arith.constant 0 : index
    %6 = vector.load %arg1[%c0_5, %c0_6] : memref<48x128xf32, #tpu.memory_space<vmem>>, vector<48x128xf32>
    %c0_7 = arith.constant 0 : index
    %c0_8 = arith.constant 0 : index
    %7 = vector.load %arg4[%c0_7, %c0_8] : memref<1x128xf32, #tpu.memory_space<vmem>>, vector<1x128xf32>
    %8 = vector.broadcast %7 : vector<1x128xf32> to vector<48x128xf32>
    %9 = arith.mulf %6, %8 : vector<48x128xf32>
    %c0_9 = arith.constant 0 : index
    %c0_10 = arith.constant 0 : index
    %10 = vector.load %arg5[%c0_9, %c0_10] : memref<1x128xf32, #tpu.memory_space<vmem>>, vector<1x128xf32>
    %11 = vector.broadcast %10 : vector<1x128xf32> to vector<48x128xf32>
    %12 = arith.addf %9, %11 : vector<48x128xf32>
    %13 = arith.addf %12, %5 : vector<48x128xf32>
    %cst_11 = arith.constant 0.000000e+00 : f32
    %14 = vector.broadcast %cst_11 : f32 to vector<48x128xf32>
    %15 = arith.maximumf %13, %14 : vector<48x128xf32>
    %c0_12 = arith.constant 0 : index
    %c0_13 = arith.constant 0 : index
    %16 = vector.load %arg7[%c0_12, %c0_13] : memref<48x128xf32, #tpu.memory_space<vmem>>, vector<48x128xf32>
    tpu.vector_store %arg7[%c0_12, %c0_13], %15 {strides = array<i32>} : memref<48x128xf32, #tpu.memory_space<vmem>>, vector<48x128xf32>,
    return
  }
  func.func @transform_0(%arg0: i32) -> (i32, i32) {
    %c0_i32 = arith.constant 0 : i32
    %c0_i32_0 = arith.constant 0 : i32
    return %arg0, %c0_i32 : i32, i32
  }
  func.func @transform_1(%arg0: i32) -> (i32, i32) {
    %c0_i32 = arith.constant 0 : i32
    %c0_i32_0 = arith.constant 0 : i32
    return %arg0, %c0_i32 : i32, i32
  }
  func.func @transform_2(%arg0: i32) -> (i32, i32) {
    %c0_i32 = arith.constant 0 : i32
    %c0_i32_0 = arith.constant 0 : i32
    %c0_i32_1 = arith.constant 0 : i32
    return %c0_i32, %c0_i32_0 : i32, i32
  }
  func.func @transform_3(%arg0: i32) -> (i32, i32) {
    %c0_i32 = arith.constant 0 : i32
    %c0_i32_0 = arith.constant 0 : i32
    %c0_i32_1 = arith.constant 0 : i32
    return %c0_i32, %c0_i32_0 : i32, i32
  }
  func.func @transform_4(%arg0: i32) -> (i32, i32) {
    %c0_i32 = arith.constant 0 : i32
    %c0_i32_0 = arith.constant 0 : i32
    %c0_i32_1 = arith.constant 0 : i32
    return %c0_i32, %c0_i32_0 : i32, i32
  }
  func.func @transform_5(%arg0: i32) -> (i32, i32) {
    %c0_i32 = arith.constant 0 : i32
    %c0_i32_0 = arith.constant 0 : i32
    %c0_i32_1 = arith.constant 0 : i32
    return %c0_i32, %c0_i32_0 : i32, i32
  }
  func.func @transform_6(%arg0: i32) -> (i32, i32) {
    %c0_i32 = arith.constant 0 : i32
    %c0_i32_0 = arith.constant 0 : i32
    return %arg0, %c0_i32 : i32, i32
  }
}

</mosaic_0001>

<bundles_post_ra>
// kernel: residual_forward.5
= control target key start
LH: loop header
LB: loop body
LE: loop exit
PB: predicated region body
PF: predicated region fallthrough
CT: control target
= control target key end

     0   :  { %s374_s12 = smov 0   ;;  %s397_s0 = inlined_call_operand.vmem [shape: f32[144,128], index: 0, kind: input, shape index: {}]   ;;  %s398_s1 = inlined_call_operand.vmem [shape: f32[1,128], index: 1, kind: input, shape index: {}]   ;;  %s399_s2 = inlined_call_operand.vmem [shape: f32[1,128], index: 2, kind: input, shape index: {}]   ;;  %s400_s3 = inlined_call_operand.vmem [shape: bf16[144,128], index: 3, kind: output, shape index: {}]  }
   0x1 LB: > { %s298_s13 = sadd.s32 4294967295, %s352_s12   ;;  %p302_p0 = scmp.ge.s32.totalorder %s352_s12, 1  ;;  %s352_s12 = sphi %s374_s12, %s13_s12  }
   0x2   : > { %p138_p1 = scmp.lt.s32.totalorder %s352_s12, 4 }
   0x4   : > { %p139_p2 = pnand %p302_p0, %p138_p1 }
   0x5   : > { %s162_s14 = smul.u32 (!%p139_p2), 6, %s298_s13  ;;  %v305_v0 = vld [vmem:[%s398_s1] ss:$0 sm:$0xff] (!%p139_p2) }
   0x6   : > { %142 = sbr.rel (%p139_p2) target bundleno = 27 (0x1b), region = 32  ;;  %v306_v1 = vld [vmem:[%s399_s2] ss:$0 sm:$0xff] (!%p139_p2) }
   0x7   : > { %p163_p3 = scmp.lt.s32.totalorder (!%p139_p2), %s162_s14, 17 }
   0xd   : > { %s402_s14 = smov (!%p163_p3, %s162_s14), 17 }
   0xe   : > { %s303_s15 = sshll.u32 %s402_s14, 3  ;;  %s304_s23 = sshll.u32 %s402_s14, 2 }
   0xf   : > { %s166_s20 = scalar_lea.vmem %s397_s0, %s303_s15  ;;  %s172_s26 = scalar_lea.vmem %s400_s3, %s304_s23 }
  0x10   : > { %v174_v2 = vld [vmem:[%s166_s20] sm:$0xff]  ;;  %v175_v3 = vld [vmem:[%s166_s20 + $0x8] sm:$0xff]  ;;  %v176_v4 = vld [vmem:[%s166_s20 + $0x10] sm:$0xff] }
  0x11   : > { %v187_v5 = vmul.f32 %v305_v0, %v174_v2  ;;  %v188_v6 = vmul.f32 %v305_v0, %v175_v3  ;;  %v177_v7 = vld [vmem:[%s166_s20 + $0x18] sm:$0xff]  ;;  %v189_v8 = vmul.f32 %v305_v0, %v176_v4  ;;  %v178_v9 = vld [vmem:[%s166_s20 + $0x20] sm:$0xff]  ;;  %v179_v10 = vld [vmem:[%s166_s20 + $0x28] sm:$0xff] }
  0x12   : > { %v190_v11 = vmul.f32 %v305_v0, %v177_v7  ;;  %v191_v12 = vmul.f32 %v305_v0, %v178_v9  ;;  %v192_v13 = vmul.f32 %v305_v0, %v179_v10 }
  0x13   : > { %v200_v14 = vadd.f32 %v306_v1, %v187_v5  ;;  %v201_v15 = vadd.f32 %v306_v1, %v188_v6  ;;  %v202_v16 = vadd.f32 %v306_v1, %v189_v8 }
  0x14   : > { %v203_v17 = vadd.f32 %v306_v1, %v190_v11  ;;  %v204_v18 = vadd.f32 %v306_v1, %v191_v12  ;;  %v205_v19 = vadd.f32 %v306_v1, %v192_v13 }
  0x15   : > { %v206_v20 = vmax.f32 %v200_v14, 0.0  ;;  %v207_v21 = vmax.f32 %v201_v15, 0.0  ;;  %v208_v22 = vmax.f32 %v202_v16, 0.0 }
  0x16   : > { %v209_v23 = vmax.f32 %v203_v17, 0.0  ;;  %v210_v24 = vmax.f32 %v204_v18, 0.0  ;;  %v211_v25 = vmax.f32 %v205_v19, 0.0 }
  0x17   : > { %v324_v26 = vpack.c.bf16 %v207_v21, %v206_v20 }
  0x18   : > { %v329_v27 = vpack.c.bf16 %v209_v23, %v208_v22  ;;  %v334_v28 = vpack.c.bf16 %v211_v25, %v210_v24 }
  0x19   : > { %325 = vst [vmem:[%s172_s26] sm:$0xff] %v324_v26  }
  0x1a   : > { %336 = vst [vmem:[%s172_s26 + $0x8] sm:$0xff] %v329_v27   ;;  %337 = vst [vmem:[%s172_s26 + $0x10] sm:$0xff] %v334_v28  }
  0x1b PF: > { %s13_s12 = sadd.s32 1, %s352_s12  }
  0x1c   : > { %p10_p4 = scmp.ge.s32.totalorder %s13_s12, 5  }
  0x1e   :  { %12 = sbr.rel (!%p10_p4) target bundleno = 1 (0x1), region = 62 }

// kernel: residual_forward.4
= control target key start
LH: loop header
LB: loop body
LE: loop exit
PB: predicated region body
PF: predicated region fallthrough
CT: control target
= control target key end

     0   :  { %s558_s15 = smov 0   ;;  %s608_s0 = inlined_call_operand.vmem [shape: bf16[144,36], index: 0, kind: input, shape index: {}]   ;;  %s609_s1 = inlined_call_operand.vmem [shape: bf16[36,128], index: 1, kind: input, shape index: {}]   ;;  %s610_s2 = inlined_call_operand.vmem [shape: f32[1,128], index: 2, kind: input, shape index: {}]   ;;  %s611_s3 = inlined_call_operand.vmem [shape: f32[144,128], index: 3, kind: output, shape index: {0}]   ;;  %s612_s4 = inlined_call_operand.vmem [shape: f32[24,128], index: 4, kind: output, shape index: {1}]  }
   0x1 LB: > { %s564_s16 = sadd.s32 4294967295, %s529_s15   ;;  %p461_p0 = scmp.ge.s32.totalorder %s529_s15, 1  ;;  %s529_s15 = sphi %s558_s15, %s15_s15  }
   0x2   : > { %p166_p1 = scmp.lt.s32.totalorder %s529_s15, 4 }
   0x4   : > { %p167_p2 = pnand %p461_p0, %p166_p1 }
   0x5   : > { %v517_v0 = vld [vmem:[%s609_s1] sm:$0xff] (!%p167_p2)   ;;  %v531_v1 = vmov (!%p167_p2), 0.0   ;;  %v518_v2 = vld [vmem:[%s609_s1 + $0x8] sm:$0xff] (!%p167_p2)   ;;  %v519_v3 = vld [vmem:[%s609_s1 + $0x10] ss:$0 sps:$4 sm:$0x33] (!%p167_p2)  }
   0x6   : > { %170 = sbr.rel (%p167_p2) target bundleno = 261 (0x105), region = 32  ;;  %483 = vmatprep.subr.bf16.mxu0 (!%p167_p2), %v531_v1  ;;  %501 = vmatprep.subr.bf16.mxu1 (!%p167_p2), %v531_v1  ;;  %vm271_vm0 = vcmask (!%p167_p2), 1041408   ;;  %vm532_vm1 = vmmov (!%p167_p2), 0   ;;  %vm261_vm2 = vcmask (!%p167_p2), 293888   ;;  %v465_v8 = vld [vmem:[%s610_s2] ss:$0 sm:$0xff] (!%p167_p2) }
   0x7   : > { %484 = vmatpush3.bf16.msra.mxu0 (!%p167_p2), %v517_v0  ;;  %504 = vmatpush3.bf16.msra.mxu1 (!%p167_p2), %v517_v0  ;;  %s196_s23 = smul.u32 (!%p167_p2), 6, %s564_s16  ;;  %v273_v4 = vsel (!%p167_p2), %vm271_vm0, %v519_v3, 0  ;;  %p208_p4 = scmp.lt.s32.totalorder (!%p167_p2), %s564_s16, 2  ;;  %vm366_vm3 = vcmask (!%p167_p2), 1040384  }
   0x8   : > { %485 = vmatprep.subr.bf16.mxu0 (!%p167_p2), %v531_v1  ;;  %502 = vmatprep.subr.bf16.mxu1 (!%p167_p2), %v531_v1 }
   0x9   : > { %489 = vmatprep.mubr.msk.bf16.mxu0 (!%p167_p2), %vm532_vm1, %v531_v1  ;;  %493 = vmatprep.mubr.msk.bf16.mxu1 (!%p167_p2), %vm532_vm1, %v531_v1  ;;  %p197_p3 = scmp.lt.s32.totalorder (!%p167_p2), %s196_s23, 17 }
   0xb   : > { %486 = vmatpush3.bf16.msra.mxu0 (!%p167_p2), %v518_v2  ;;  %505 = vmatpush3.bf16.msra.mxu1 (!%p167_p2), %v518_v2 }
   0xc   : > { %487 = vmatprep.subr.bf16.mxu0 (!%p167_p2), %v531_v1  ;;  %503 = vmatprep.subr.bf16.mxu1 (!%p167_p2), %v531_v1 }
   0xd   : > { %s614_s23 = smov (!%p197_p3, %s196_s23), 17  ;;  %s616_s16 = smov (!%p208_p4, %s564_s16), 2 }
   0xe   : > { %s462_s24 = sshll.u32 %s614_s23, 2  ;;  %s463_s28 = sshll.u32 %s614_s23, 3 }
   0xf   : > { %488 = vmatpush3.bf16.msra.mxu0 %v273_v4  ;;  %506 = vmatpush3.bf16.msra.mxu1 %v273_v4  ;;  %s200_s27 = scalar_lea.vmem %s608_s0, %s462_s24  ;;  %s591_s7 = scalar_lea.vmem %s611_s3, %s463_s28 }
  0x10   : > { %v520_v5 = vld [vmem:[%s200_s27] sm:$0xff]   ;;  %v521_v6 = vld [vmem:[%s200_s27 + $0x8] sm:$0xff]   ;;  %v522_v7 = vld [vmem:[%s200_s27 + $0x10] sm:$0xff]   ;;  %s464_s8 = sshll.u32 %s616_s16, 3 }
  0x11   : > { %s211_s11 = scalar_lea.vmem %s612_s4, %s464_s8 }
  0x12   : > { %490 = vmatmul.mubr.msk.bf16.vlgmr.msra.gmra.mrb[0].mxu0 %vm261_vm2, %v520_v5  ;;  %494 = vmatmul.mubr.msk.bf16.vlgmr.msra.gmra.mrb[0].mxu1 %vm261_vm2, %v521_v6 }
  0x13   : > { %497 = vmatprep.mubr.msk.bf16.mxu1 %vm532_vm1, %v531_v1 }
  0x1a   : > { %498 = vmatmul.mubr.msk.bf16.gmra.mrb[4].mxu1 %vm261_vm2, %v522_v7 }
  0xe5   : > { %v309_v9 = vpop.f32.mrb[0].mxu0  ;;  %v317_v11 = vpop.f32.mrb[0].mxu1 }
  0xe6   : > { %v310_v10 = vadd.f32 %v465_v8, %v309_v9  ;;  %v491_v12 = vpop.f32.mrb[1].mxu0  ;;  %v318_v13 = vadd.f32 %v465_v8, %v317_v11  ;;  %v495_v14 = vpop.f32.mrb[1].mxu1 }
  0xe7   : > { %v312_v15 = vpop.f32.mrb[2].mxu0  ;;  %v320_v17 = vpop.f32.mrb[2].mxu1 }
  0xe8   : > { %332 = vst [vmem:[%s591_s7] sm:$0xff] %v310_v10  ;;  %v313_v16 = vadd.f32 %v465_v8, %v312_v15  ;;  %v492_v18 = vpop.f32.mrb[3].mxu0  ;;  %334 = vst [vmem:[%s591_s7 + $0x10] sm:$0xff] %v318_v13  ;;  %v321_v19 = vadd.f32 %v465_v8, %v320_v17  ;;  %v496_v20 = vpop.f32.mrb[3].mxu1  ;;  %v349_v21 = vmul.f32 %v310_v10, %v310_v10 }
  0xe9   : > { %v351_v24 = vmul.f32 %v318_v13, %v318_v13 }
  0xea   : > { %333 = vst [vmem:[%s591_s7 + $0x8] sm:$0xff] %v313_v16  ;;  %v338_v22 = vadd.f32 %v313_v16, %v310_v10  ;;  %v350_v23 = vmul.f32 %v313_v16, %v313_v16  ;;  %335 = vst [vmem:[%s591_s7 + $0x18] sm:$0xff] %v321_v19  ;;  %v352_v28 = vmul.f32 %v321_v19, %v321_v19 }
  0xec   : > { %v355_v25 = vadd.f32 %v350_v23, %v349_v21  ;;  %v339_v26 = vadd.f32 %v338_v22, %v318_v13 }
  0xed   : > { %v325_v30 = vpop.f32.mrb[4].mxu1 }
  0xee   : > { %v340_v27 = vadd.f32 %v339_v26, %v321_v19  ;;  %v356_v29 = vadd.f32 %v355_v25, %v351_v24  ;;  %v326_v31 = vadd.f32 %v465_v8, %v325_v30  ;;  %v499_v32 = vpop.f32.mrb[5].mxu1 }
  0xef   : > { %v328_v34 = vpop.f32.mrb[6].mxu1 }
  0xf0   : > { %v357_v33 = vadd.f32 %v356_v29, %v352_v28  ;;  %336 = vst [vmem:[%s591_s7 + $0x20] sm:$0xff] %v326_v31  ;;  %v341_v35 = vadd.f32 %v340_v27, %v326_v31  ;;  %v353_v36 = vmul.f32 %v326_v31, %v326_v31  ;;  %v329_v37 = vadd.f32 %v465_v8, %v328_v34  ;;  %v500_v38 = vpop.f32.mrb[7].mxu1 }
  0xf2   : > { %v358_v39 = vadd.f32 %v357_v33, %v353_v36  ;;  %337 = vst [vmem:[%s591_s7 + $0x28] sm:$0xff] %v329_v37  ;;  %v342_v40 = vadd.f32 %v341_v35, %v329_v37  ;;  %v354_v41 = vmul.f32 %v329_v37, %v329_v37 }
  0xf4   : > { %v343_v42 = vrot.slane %v342_v40, 4  ;;  %v359_v43 = vadd.f32 %v358_v39, %v354_v41 }
  0xf6   : > { %v344_v44 = vadd.f32 %v343_v42, %v342_v40  ;;  %v360_v45 = vrot.slane %v359_v43, 4 }
  0xf8   : > { %v345_v46 = vrot.slane %v344_v44, 2  ;;  %v361_v47 = vadd.f32 %v360_v45, %v359_v43 }
  0xfa   : > { %v346_v48 = vadd.f32 %v345_v46, %v344_v44  ;;  %v362_v49 = vrot.slane %v361_v47, 2 }
  0xfc   : > { %v347_v50 = vrot.slane %v346_v48, 1  ;;  %v363_v51 = vadd.f32 %v362_v49, %v361_v47 }
  0xfe   : > { %v364_v52 = vrot.slane %v363_v51, 1  ;;  %v348_v53 = vadd.f32 %v347_v50, %v346_v48 }
 0x100   : > { %v365_v54 = vadd.f32 %v364_v52, %v363_v51 }
 0x102   : > { %v367_v55 = vsel %vm366_vm3, %v348_v53, %v365_v54 }
 0x103   : > { %v368_v56 = vsel %vm271_vm0, %v367_v55, 0.0 }
 0x104   : > { %369 = vst [vmem:[%s211_s11] sm:$0xff] %v368_v56 }
 0x105 PF: > { %s15_s15 = sadd.s32 1, %s529_s15  }
 0x106   : > { %p12_p5 = scmp.ge.s32.totalorder %s15_s15, 5  }
 0x108   :  { %14 = sbr.rel (!%p12_p5) target bundleno = 1 (0x1), region = 74 }

// kernel: residual_forward.7
= control target key start
LH: loop header
LB: loop body
LE: loop exit
PB: predicated region body
PF: predicated region fallthrough
CT: control target
= control target key end

     0   :  { %s593_s21 = smov 0   ;;  %s633_s0 = inlined_call_operand.vmem [shape: f32[144,128], index: 0, kind: input, shape index: {}]   ;;  %s634_s1 = inlined_call_operand.vmem [shape: bf16[144,4], index: 1, kind: input, shape index: {}]   ;;  %s635_s2 = inlined_call_operand.vmem [shape: bf16[4,128], index: 2, kind: input, shape index: {}]   ;;  %s636_s3 = inlined_call_operand.vmem [shape: f32[1,128], index: 3, kind: input, shape index: {}]   ;;  %s637_s4 = inlined_call_operand.vmem [shape: f32[1,128], index: 4, kind: input, shape index: {}]   ;;  %s638_s5 = inlined_call_operand.vmem [shape: f32[1,128], index: 5, kind: input, shape index: {}]   ;;  %s639_s6 = inlined_call_operand.vmem [shape: f32[144,128], index: 6, kind: output, shape index: {}]  }
   0x1 LB: > { %s496_s22 = sadd.s32 4294967295, %s554_s21   ;;  %p500_p0 = scmp.ge.s32.totalorder %s554_s21, 1  ;;  %s554_s21 = sphi %s593_s21, %s16_s21  }
   0x2   : > { %p224_p1 = scmp.lt.s32.totalorder %s554_s21, 4 }
   0x4   : > { %p225_p2 = pnand %p500_p0, %p224_p1 }
   0x5   : > { %v284_v0 = vld [vmem:[%s635_s2] sm:$0x3] (!%p225_p2)  ;;  %vm317_vm0 = vcmask (!%p225_p2), 1041408   ;;  %s259_s25 = smul.u32 (!%p225_p2), 6, %s496_s22  ;;  %v556_v1 = vmov (!%p225_p2), 0.0   ;;  %vm557_vm1 = vmmov (!%p225_p2), 0  }
   0x6   : > { %228 = sbr.rel (%p225_p2) target bundleno = 246 (0xf6), region = 44  ;;  %533 = vmatprep.subr.bf16.mxu1 (!%p225_p2), %v556_v1  ;;  %v319_v2 = vsel (!%p225_p2), %vm317_vm0, %v284_v0, 0  ;;  %525 = vmatprep.mubr.msk.bf16.mxu1 (!%p225_p2), %vm557_vm1, %v556_v1  ;;  %vm307_vm2 = vcmask (!%p225_p2), 31744   ;;  %v511_v7 = vld [vmem:[%s636_s3] ss:$0 sm:$0xff] (!%p225_p2) }
   0x7   : > { %534 = vmatpush3.bf16.msra.mxu1 (!%p225_p2), %v319_v2  ;;  %p260_p3 = scmp.lt.s32.totalorder (!%p225_p2), %s259_s25, 17  ;;  %519 = vmatprep.subr.bf16.mxu0 (!%p225_p2), %v556_v1  ;;  %v512_v12 = vld [vmem:[%s637_s4] ss:$0 sm:$0xff] (!%p225_p2) }
   0x8   : > { %520 = vmatpush3.bf16.msra.mxu0 (!%p225_p2), %v319_v2  ;;  %521 = vmatprep.mubr.msk.bf16.mxu0 (!%p225_p2), %vm557_vm1, %v556_v1  ;;  %v504_v15 = vld [vmem:[%s638_s5] ss:$0 sm:$0xff] (!%p225_p2) }
   0xd   : > { %s641_s25 = smov (!%p260_p3, %s259_s25), 17 }
   0xe   : > { %s502_s26 = sshll.u32 %s641_s25, 2  ;;  %s501_s30 = sshll.u32 %s641_s25, 3 }
   0xf   : > { %s269_s29 = scalar_lea.vmem %s634_s1, %s502_s26  ;;  %s263_s9 = scalar_lea.vmem %s633_s0, %s501_s30 }
  0x10   : > { %v545_v3 = vld [vmem:[%s269_s29 + $0x8] sm:$0xff]   ;;  %v546_v4 = vld [vmem:[%s269_s29] sm:$0xff]   ;;  %v547_v5 = vld [vmem:[%s269_s29 + $0x10] sm:$0xff]   ;;  %s275_s18 = scalar_lea.vmem %s639_s6, %s501_s30 }
  0x11   : > { %526 = vmatmul.mubr.msk.bf16.vlgmr.msra.gmra.mrb[0].mxu1 %vm307_vm2, %v545_v3  ;;  %522 = vmatmul.mubr.msk.bf16.vlgmr.msra.gmra.mrb[0].mxu0 %vm307_vm2, %v546_v4  ;;  %v380_v6 = vld [vmem:[%s263_s9 + $0x10] sm:$0xff]  ;;  %v378_v8 = vld [vmem:[%s263_s9] sm:$0xff]  ;;  %v381_v9 = vld [vmem:[%s263_s9 + $0x18] sm:$0xff] }
  0x12   : > { %529 = vmatprep.mubr.msk.bf16.mxu1 %vm557_vm1, %v556_v1  ;;  %v393_v10 = vmul.f32 %v511_v7, %v380_v6  ;;  %v379_v11 = vld [vmem:[%s263_s9 + $0x8] sm:$0xff]  ;;  %v391_v13 = vmul.f32 %v511_v7, %v378_v8  ;;  %v394_v14 = vmul.f32 %v511_v7, %v381_v9  ;;  %v382_v20 = vld [vmem:[%s263_s9 + $0x20] sm:$0xff] }
  0x13   : > { %v392_v16 = vmul.f32 %v511_v7, %v379_v11  ;;  %v383_v29 = vld [vmem:[%s263_s9 + $0x28] sm:$0xff]  ;;  %v395_v34 = vmul.f32 %v511_v7, %v382_v20 }
  0x14   : > { %v406_v17 = vadd.f32 %v512_v12, %v393_v10  ;;  %v404_v19 = vadd.f32 %v512_v12, %v391_v13  ;;  %v407_v23 = vadd.f32 %v512_v12, %v394_v14  ;;  %v396_v40 = vmul.f32 %v511_v7, %v383_v29 }
  0x15   : > { %v405_v28 = vadd.f32 %v512_v12, %v392_v16  ;;  %v408_v44 = vadd.f32 %v512_v12, %v395_v34 }
  0x16   : > { %v409_v49 = vadd.f32 %v512_v12, %v396_v40 }
  0x19   : > { %530 = vmatmul.mubr.msk.bf16.gmra.mrb[4].mxu1 %vm307_vm2, %v547_v5 }
  0xe4   : > { %v363_v18 = vpop.f32.mrb[0].mxu1  ;;  %v355_v24 = vpop.f32.mrb[0].mxu0 }
  0xe5   : > { %v364_v21 = vadd.f32 %v504_v15, %v363_v18  ;;  %v527_v22 = vpop.f32.mrb[1].mxu1  ;;  %v356_v26 = vadd.f32 %v504_v15, %v355_v24  ;;  %v523_v27 = vpop.f32.mrb[1].mxu0 }
  0xe6   : > { %v366_v25 = vpop.f32.mrb[2].mxu1  ;;  %v358_v33 = vpop.f32.mrb[2].mxu0 }
  0xe7   : > { %v412_v30 = vadd.f32 %v406_v17, %v364_v21  ;;  %v367_v31 = vadd.f32 %v504_v15, %v366_v25  ;;  %v528_v32 = vpop.f32.mrb[3].mxu1  ;;  %v410_v35 = vadd.f32 %v404_v19, %v356_v26  ;;  %v359_v36 = vadd.f32 %v504_v15, %v358_v33  ;;  %v524_v37 = vpop.f32.mrb[3].mxu0 }
  0xe9   : > { %v418_v38 = vmax.f32 %v412_v30, 0.0  ;;  %v413_v39 = vadd.f32 %v407_v23, %v367_v31  ;;  %v416_v41 = vmax.f32 %v410_v35, 0.0  ;;  %v411_v42 = vadd.f32 %v405_v28, %v359_v36 }
  0xeb   : > { %424 = vst [vmem:[%s275_s18 + $0x10] sm:$0xff] %v418_v38  ;;  %v419_v43 = vmax.f32 %v413_v39, 0.0  ;;  %422 = vst [vmem:[%s275_s18] sm:$0xff] %v416_v41  ;;  %v417_v45 = vmax.f32 %v411_v42, 0.0 }
  0xec   : > { %v371_v46 = vpop.f32.mrb[4].mxu1 }
  0xed   : > { %425 = vst [vmem:[%s275_s18 + $0x18] sm:$0xff] %v419_v43  ;;  %v372_v47 = vadd.f32 %v504_v15, %v371_v46  ;;  %v531_v48 = vpop.f32.mrb[5].mxu1  ;;  %423 = vst [vmem:[%s275_s18 + $0x8] sm:$0xff] %v417_v45 }
  0xee   : > { %v374_v50 = vpop.f32.mrb[6].mxu1 }
  0xef   : > { %v414_v51 = vadd.f32 %v408_v44, %v372_v47  ;;  %v375_v52 = vadd.f32 %v504_v15, %v374_v50  ;;  %v532_v53 = vpop.f32.mrb[7].mxu1 }
  0xf1   : > { %v420_v54 = vmax.f32 %v414_v51, 0.0  ;;  %v415_v55 = vadd.f32 %v409_v49, %v375_v52 }
  0xf3   : > { %426 = vst [vmem:[%s275_s18 + $0x20] sm:$0xff] %v420_v54  ;;  %v421_v56 = vmax.f32 %v415_v55, 0.0 }
  0xf5   : > { %427 = vst [vmem:[%s275_s18 + $0x28] sm:$0xff] %v421_v56 }
  0xf6 PF: > { %s16_s21 = sadd.s32 1, %s554_s21  }
  0xf7   : > { %p13_p4 = scmp.ge.s32.totalorder %s16_s21, 5  }
  0xf9   :  { %15 = sbr.rel (!%p13_p4) target bundleno = 1 (0x1), region = 77 }

// kernel: residual_forward.6
= control target key start
LH: loop header
LB: loop body
LE: loop exit
PB: predicated region body
PF: predicated region fallthrough
CT: control target
= control target key end

     0   :  { %s589_s15 = smov 0   ;;  %s643_s0 = inlined_call_operand.vmem [shape: bf16[144,72], index: 0, kind: input, shape index: {}]   ;;  %s644_s1 = inlined_call_operand.vmem [shape: bf16[72,128], index: 1, kind: input, shape index: {}]   ;;  %s645_s2 = inlined_call_operand.vmem [shape: f32[1,128], index: 2, kind: input, shape index: {}]   ;;  %s646_s3 = inlined_call_operand.vmem [shape: f32[144,128], index: 3, kind: output, shape index: {0}]   ;;  %s647_s4 = inlined_call_operand.vmem [shape: f32[24,128], index: 4, kind: output, shape index: {1}]  }
   0x1 LB: > { %s595_s16 = sadd.s32 4294967295, %s560_s15   ;;  %p478_p0 = scmp.ge.s32.totalorder %s560_s15, 1  ;;  %s560_s15 = sphi %s589_s15, %s15_s15  }
   0x2   : > { %p166_p1 = scmp.lt.s32.totalorder %s560_s15, 4 }
   0x4   : > { %p167_p2 = pnand %p478_p0, %p166_p1 }
   0x5   : > { %v546_v0 = vld [vmem:[%s644_s1] sm:$0xff] (!%p167_p2)   ;;  %v562_v1 = vmov (!%p167_p2), 0.0   ;;  %v547_v2 = vld [vmem:[%s644_s1 + $0x8] sm:$0xff] (!%p167_p2)   ;;  %s196_s21 = smul.u32 (!%p167_p2), 6, %s595_s16  ;;  %vm563_vm0 = vmmov (!%p167_p2), 0   ;;  %v548_v3 = vld [vmem:[%s644_s1 + $0x10] sm:$0xff] (!%p167_p2)  }
   0x6   : > { %170 = sbr.rel (%p167_p2) target bundleno = 269 (0x10d), region = 32  ;;  %504 = vmatprep.subr.bf16.mxu0 (!%p167_p2), %v562_v1  ;;  %526 = vmatprep.subr.bf16.mxu1 (!%p167_p2), %v562_v1  ;;  %v549_v4 = vld [vmem:[%s644_s1 + $0x18] sm:$0xff] (!%p167_p2)   ;;  %v550_v5 = vld [vmem:[%s644_s1 + $0x20] ss:$0 sps:$4 sm:$0xff] (!%p167_p2)   ;;  %vm287_vm1 = vcmask (!%p167_p2), 1043456   ;;  %vm277_vm2 = vcmask (!%p167_p2), 588800  }
   0x7   : > { %505 = vmatpush3.bf16.msra.mxu0 (!%p167_p2), %v546_v0  ;;  %531 = vmatpush3.bf16.msra.mxu1 (!%p167_p2), %v546_v0  ;;  %p197_p3 = scmp.lt.s32.totalorder (!%p167_p2), %s196_s21, 17  ;;  %v289_v6 = vsel (!%p167_p2), %vm287_vm1, %v550_v5, 0  ;;  %v482_v10 = vld [vmem:[%s645_s2] ss:$0 sm:$0xff] (!%p167_p2)  ;;  %p208_p4 = scmp.lt.s32.totalorder (!%p167_p2), %s595_s16, 2  ;;  %vm382_vm3 = vcmask (!%p167_p2), 1040384  }
   0x8   : > { %506 = vmatprep.subr.bf16.mxu0 (!%p167_p2), %v562_v1  ;;  %527 = vmatprep.subr.bf16.mxu1 (!%p167_p2), %v562_v1  ;;  %vm384_vm4 = vcmask (!%p167_p2), 1041408  }
   0x9   : > { %514 = vmatprep.mubr.msk.bf16.mxu0 (!%p167_p2), %vm563_vm0, %v562_v1  ;;  %518 = vmatprep.mubr.msk.bf16.mxu1 (!%p167_p2), %vm563_vm0, %v562_v1 }
   0xb   : > { %507 = vmatpush3.bf16.msra.mxu0 (!%p167_p2), %v547_v2  ;;  %532 = vmatpush3.bf16.msra.mxu1 (!%p167_p2), %v547_v2 }
   0xc   : > { %508 = vmatprep.subr.bf16.mxu0 (!%p167_p2), %v562_v1  ;;  %528 = vmatprep.subr.bf16.mxu1 (!%p167_p2), %v562_v1 }
   0xd   : > { %s649_s21 = smov (!%p197_p3, %s196_s21), 17  ;;  %s651_s16 = smov (!%p208_p4, %s595_s16), 2 }
   0xe   : > { %s479_s24 = sshll.u32 %s649_s21, 2  ;;  %s480_s6 = sshll.u32 %s649_s21, 3 }
   0xf   : > { %509 = vmatpush3.bf16.msra.mxu0 %v548_v3  ;;  %533 = vmatpush3.bf16.msra.mxu1 %v548_v3  ;;  %s200_s29 = scalar_lea.vmem %s643_s0, %s479_s24  ;;  %s627_s11 = scalar_lea.vmem %s646_s3, %s480_s6 }
  0x10   : > { %510 = vmatprep.subr.bf16.mxu0 %v562_v1  ;;  %529 = vmatprep.subr.bf16.mxu1 %v562_v1  ;;  %v551_v7 = vld [vmem:[%s200_s29] sm:$0xff]   ;;  %v552_v8 = vld [vmem:[%s200_s29 + $0x8] sm:$0xff]   ;;  %v553_v9 = vld [vmem:[%s200_s29 + $0x10] sm:$0xff]   ;;  %s481_s12 = sshll.u32 %s651_s16, 3 }
  0x11   : > { %s211_s17 = scalar_lea.vmem %s647_s4, %s481_s12 }
  0x13   : > { %511 = vmatpush3.bf16.msra.mxu0 %v549_v4  ;;  %534 = vmatpush3.bf16.msra.mxu1 %v549_v4 }
  0x14   : > { %512 = vmatprep.subr.bf16.mxu0 %v562_v1  ;;  %530 = vmatprep.subr.bf16.mxu1 %v562_v1 }
  0x17   : > { %513 = vmatpush3.bf16.msra.mxu0 %v289_v6  ;;  %535 = vmatpush3.bf16.msra.mxu1 %v289_v6 }
  0x1a   : > { %515 = vmatmul.mubr.msk.bf16.vlgmr.msra.gmra.mrb[0].mxu0 %vm277_vm2, %v551_v7  ;;  %519 = vmatmul.mubr.msk.bf16.vlgmr.msra.gmra.mrb[0].mxu1 %vm277_vm2, %v552_v8 }
  0x1b   : > { %522 = vmatprep.mubr.msk.bf16.mxu1 %vm563_vm0, %v562_v1 }
  0x22   : > { %523 = vmatmul.mubr.msk.bf16.gmra.mrb[4].mxu1 %vm277_vm2, %v553_v9 }
  0xed   : > { %v325_v11 = vpop.f32.mrb[0].mxu0  ;;  %v333_v12 = vpop.f32.mrb[0].mxu1 }
  0xee   : > { %v326_v13 = vadd.f32 %v482_v10, %v325_v11  ;;  %v334_v14 = vadd.f32 %v482_v10, %v333_v12  ;;  %v516_v15 = vpop.f32.mrb[1].mxu0  ;;  %v520_v16 = vpop.f32.mrb[1].mxu1 }
  0xef   : > { %v328_v17 = vpop.f32.mrb[2].mxu0  ;;  %v336_v18 = vpop.f32.mrb[2].mxu1 }
  0xf0   : > { %348 = vst [vmem:[%s627_s11] sm:$0xff] %v326_v13  ;;  %350 = vst [vmem:[%s627_s11 + $0x10] sm:$0xff] %v334_v14  ;;  %v329_v19 = vadd.f32 %v482_v10, %v328_v17  ;;  %v337_v20 = vadd.f32 %v482_v10, %v336_v18  ;;  %v517_v21 = vpop.f32.mrb[3].mxu0  ;;  %v521_v22 = vpop.f32.mrb[3].mxu1  ;;  %v365_v23 = vmul.f32 %v326_v13, %v326_v13 }
  0xf1   : > { %v367_v26 = vmul.f32 %v334_v14, %v334_v14 }
  0xf2   : > { %349 = vst [vmem:[%s627_s11 + $0x8] sm:$0xff] %v329_v19  ;;  %v354_v24 = vadd.f32 %v329_v19, %v326_v13  ;;  %v366_v25 = vmul.f32 %v329_v19, %v329_v19  ;;  %351 = vst [vmem:[%s627_s11 + $0x18] sm:$0xff] %v337_v20  ;;  %v368_v31 = vmul.f32 %v337_v20, %v337_v20 }
  0xf4   : > { %v371_v27 = vadd.f32 %v366_v25, %v365_v23  ;;  %v355_v28 = vadd.f32 %v354_v24, %v334_v14 }
  0xf5   : > { %v341_v29 = vpop.f32.mrb[4].mxu1 }
  0xf6   : > { %v356_v30 = vadd.f32 %v355_v28, %v337_v20  ;;  %v372_v32 = vadd.f32 %v371_v27, %v367_v26  ;;  %v342_v33 = vadd.f32 %v482_v10, %v341_v29  ;;  %v524_v34 = vpop.f32.mrb[5].mxu1 }
  0xf7   : > { %v344_v35 = vpop.f32.mrb[6].mxu1 }
  0xf8   : > { %v373_v36 = vadd.f32 %v372_v32, %v368_v31  ;;  %352 = vst [vmem:[%s627_s11 + $0x20] sm:$0xff] %v342_v33  ;;  %v357_v37 = vadd.f32 %v356_v30, %v342_v33  ;;  %v369_v38 = vmul.f32 %v342_v33, %v342_v33  ;;  %v345_v39 = vadd.f32 %v482_v10, %v344_v35  ;;  %v525_v40 = vpop.f32.mrb[7].mxu1 }
  0xfa   : > { %v374_v41 = vadd.f32 %v373_v36, %v369_v38  ;;  %353 = vst [vmem:[%s627_s11 + $0x28] sm:$0xff] %v345_v39  ;;  %v358_v42 = vadd.f32 %v357_v37, %v345_v39  ;;  %v370_v43 = vmul.f32 %v345_v39, %v345_v39 }
  0xfc   : > { %v359_v44 = vrot.slane %v358_v42, 4  ;;  %v375_v45 = vadd.f32 %v374_v41, %v370_v43 }
  0xfe   : > { %v360_v46 = vadd.f32 %v359_v44, %v358_v42  ;;  %v376_v47 = vrot.slane %v375_v45, 4 }
 0x100   : > { %v361_v48 = vrot.slane %v360_v46, 2  ;;  %v377_v49 = vadd.f32 %v376_v47, %v375_v45 }
 0x102   : > { %v362_v50 = vadd.f32 %v361_v48, %v360_v46  ;;  %v378_v51 = vrot.slane %v377_v49, 2 }
 0x104   : > { %v363_v52 = vrot.slane %v362_v50, 1  ;;  %v379_v53 = vadd.f32 %v378_v51, %v377_v49 }
 0x106   : > { %v380_v54 = vrot.slane %v379_v53, 1  ;;  %v364_v55 = vadd.f32 %v363_v52, %v362_v50 }
 0x108   : > { %v381_v56 = vadd.f32 %v380_v54, %v379_v53 }
 0x10a   : > { %v383_v57 = vsel %vm382_vm3, %v364_v55, %v381_v56 }
 0x10b   : > { %v385_v58 = vsel %vm384_vm4, %v383_v57, 0.0 }
 0x10c   : > { %386 = vst [vmem:[%s211_s17] sm:$0xff] %v385_v58 }
 0x10d PF: > { %s15_s15 = sadd.s32 1, %s560_s15  }
 0x10e   : > { %p12_p5 = scmp.ge.s32.totalorder %s15_s15, 5  }
 0x110   :  { %14 = sbr.rel (!%p12_p5) target bundleno = 1 (0x1), region = 74 }

</bundles_post_ra>
